<compile_context>
chip_gen: v6e
topology: v6e:2x2x1
jax: 0.10.0
libtpu: 0.0.40
codegen_flags: <defaults>
</compile_context>

<pallas_src>
import jax
import jax.numpy as jnp
from jax.experimental import pallas as pl
from jax.experimental.pallas import tpu as pltpu

IN_DIM = 5 * 60 + 3   # 303
IN_PAD = 384          # next multiple of 128
HID = 512
OUT_DIM = 3
OUT_PAD = 128         # lane-dense output block
MAX_TILE_B = 256      # rows per grid step (fills 256-deep MXU on v6e/v7x)


def mlp_kernel(x_ref, w1_ref, b1_ref, w2_ref, b2_ref, w3_ref, b3_ref, o_ref):
    # Layer 1: (tile_b, 384)bf16 @ (384, 512)bf16 -> f32 acc, + f32 bias, tanh
    h1 = jnp.tanh(
        jnp.dot(x_ref[...], w1_ref[...], preferred_element_type=jnp.float32)
        + b1_ref[...]
    ).astype(jnp.bfloat16)
    # Layer 2: (tile_b, 512) @ (512, 512)
    h2 = jnp.tanh(
        jnp.dot(h1, w2_ref[...], preferred_element_type=jnp.float32)
        + b2_ref[...]
    ).astype(jnp.bfloat16)
    # Layer 3: (tile_b, 512) @ (512, 128); cols 3..127 are zero-padded weights
    o_ref[...] = jnp.tanh(
        jnp.dot(h2, w3_ref[...], preferred_element_type=jnp.float32)
        + b3_ref[...]
    ).astype(o_ref.dtype)


def prepare_params(params_f32):
    """Cast weights to bf16 and zero-pad to lane-aligned shapes (done once)."""
    w1, b1, w2, b2, w3, b3 = params_f32
    w1p = (jnp.zeros((IN_PAD, HID), jnp.bfloat16)
           .at[:IN_DIM, :].set(w1.astype(jnp.bfloat16)))
    w2p = w2.astype(jnp.bfloat16)
    w3p = (jnp.zeros((HID, OUT_PAD), jnp.bfloat16)
           .at[:, :OUT_DIM].set(w3.astype(jnp.bfloat16)))
    b1p = b1.astype(jnp.float32)                          # (1, 512)
    b2p = b2.astype(jnp.float32)                          # (1, 512)
    b3p = (jnp.zeros((1, OUT_PAD), jnp.float32)
           .at[:, :OUT_DIM].set(b3.astype(jnp.float32)))  # (1, 128)
    return (w1p, b1p, w2p, b2p, w3p, b3p)


def _round_up(n, m):
    return ((n + m - 1) // m) * m


def trading_network_forward(x, prepared_params, max_tile_b=MAX_TILE_B):
    w1, b1, w2, b2, w3, b3 = prepared_params
    batch = x.shape[0]

    # Adaptive batch tile: at least 8 (sublane multiple), at most max_tile_b.
    tile_b = min(max_tile_b, max(8, _round_up(batch, 8)))
    padded_batch = _round_up(batch, tile_b)

    # Zero-pad batch (to tile multiple) and feature dim (303 -> 384), cast bf16.
    xp = jnp.zeros((padded_batch, IN_PAD), dtype=jnp.bfloat16)
    xp = xp.at[:batch, :IN_DIM].set(x.astype(jnp.bfloat16))

    grid = (padded_batch // tile_b,)

    out = pl.pallas_call(
        mlp_kernel,
        out_shape=jax.ShapeDtypeStruct((padded_batch, OUT_PAD), jnp.float32),
        grid_spec=pltpu.PrefetchScalarGridSpec(
            num_scalar_prefetch=0,
            grid=grid,
            in_specs=[
                # x: tiled over batch, pipelined
                pl.BlockSpec((tile_b, IN_PAD), lambda i: (i, 0)),
                # weights / biases: constant block index -> VMEM-resident
                pl.BlockSpec((IN_PAD, HID), lambda i: (0, 0)),
                pl.BlockSpec((1, HID), lambda i: (0, 0)),
                pl.BlockSpec((HID, HID), lambda i: (0, 0)),
                pl.BlockSpec((1, HID), lambda i: (0, 0)),
                pl.BlockSpec((HID, OUT_PAD), lambda i: (0, 0)),
                pl.BlockSpec((1, OUT_PAD), lambda i: (0, 0)),
            ],
            out_specs=pl.BlockSpec((tile_b, OUT_PAD), lambda i: (i, 0)),
        ),
        compiler_params=pltpu.CompilerParams(
            dimension_semantics=("parallel",),   # v7x: shard batch tiles on 2 TCs
        ),
    )(xp, w1, b1, w2, b2, w3, b3)

    return out[:batch, :OUT_DIM]


def init_params(key):
    """Deterministic init mirroring nn.Linear's default U(-1/sqrt(fan_in), +)."""
    keys = jax.random.split(key, 6)

    def linear(kw, kb, fan_in, fan_out):
        bound = 1.0 / jnp.sqrt(jnp.float32(fan_in))
        # stored as (in, out) so the kernel does x @ W
        w = jax.random.uniform(kw, (fan_in, fan_out), jnp.float32, -bound, bound)
        b = jax.random.uniform(kb, (1, fan_out), jnp.float32, -bound, bound)
        return w, b

    w1, b1 = linear(keys[0], keys[1], IN_DIM, HID)
    w2, b2 = linear(keys[2], keys[3], HID, HID)
    w3, b3 = linear(keys[4], keys[5], HID, OUT_DIM)
    return (w1, b1, w2, b2, w3, b3)


def reference_forward(x, params_f32):
    w1, b1, w2, b2, w3, b3 = params_f32
    h1 = jnp.tanh(x @ w1 + b1)
    h2 = jnp.tanh(h1 @ w2 + b2)
    return jnp.tanh(h2 @ w3 + b3)


if __name__ == "__main__":
    key = jax.random.PRNGKey(0)
    k_params, k_x = jax.random.split(key)

    params_f32 = init_params(k_params)
    prepared = prepare_params(params_f32)

    batch = 8
    x = jax.random.normal(k_x, (batch, IN_DIM), dtype=jnp.float32)

    out = trading_network_forward(x, prepared)
    out = jax.block_until_ready(out)

    ref = reference_forward(x, params_f32)
    assert out.shape == (batch, OUT_DIM)
    # bf16 weights/activations vs f32 reference -> loosened tolerance
    assert jnp.allclose(out, ref, atol=3e-2, rtol=3e-2), "mismatch vs reference"

    print("KERNEL_OK")
</pallas_src>

<mosaic_0001>
module attributes {stable_mosaic.version = 11 : i64} {
  func.func @mlp_kernel(%arg0: i32, %arg1: memref<8x384xbf16, #tpu.memory_space<vmem>>, %arg2: memref<384x512xbf16, #tpu.memory_space<vmem>>, %arg3: memref<1x512xf32, #tpu.memory_space<vmem>>, %arg4: memref<512x512xbf16, #tpu.memory_space<vmem>>, %arg5: memref<1x512xf32, #tpu.memory_space<vmem>>, %arg6: memref<512x128xbf16, #tpu.memory_space<vmem>>, %arg7: memref<1x128xf32, #tpu.memory_space<vmem>>, %arg8: memref<8x128xf32, #tpu.memory_space<vmem>>) attributes {dimension_semantics = [#tpu.dimension_semantics<parallel>], iteration_bounds = array<i64: 1>, scalar_prefetch = 0 : i64, scratch_operands = 0 : i64, tpu.core_type = #tpu.core_type<tc>, window_params = [{transform_indices = @transform_0, window_bounds = array<i64: 8, 384>}, {pipeline_mode = #tpu.pipeline_mode<synchronous>, transform_indices = @transform_1, window_bounds = array<i64: 384, 512>}, {pipeline_mode = #tpu.pipeline_mode<synchronous>, transform_indices = @transform_2, window_bounds = array<i64: 1, 512>}, {pipeline_mode = #tpu.pipeline_mode<synchronous>, transform_indices = @transform_3, window_bounds = array<i64: 512, 512>}, {pipeline_mode = #tpu.pipeline_mode<synchronous>, transform_indices = @transform_4, window_bounds = array<i64: 1, 512>}, {pipeline_mode = #tpu.pipeline_mode<synchronous>, transform_indices = @transform_5, window_bounds = array<i64: 512, 128>}, {pipeline_mode = #tpu.pipeline_mode<synchronous>, transform_indices = @transform_6, window_bounds = array<i64: 1, 128>}, {transform_indices = @transform_7, window_bounds = array<i64: 8, 128>}]} {
    %c0 = arith.constant 0 : index
    %c0_0 = arith.constant 0 : index
    %0 = vector.load %arg1[%c0, %c0_0] : memref<8x384xbf16, #tpu.memory_space<vmem>>, vector<8x384xbf16>
    %c0_1 = arith.constant 0 : index
    %c0_2 = arith.constant 0 : index
    %1 = vector.load %arg2[%c0_1, %c0_2] : memref<384x512xbf16, #tpu.memory_space<vmem>>, vector<384x512xbf16>
    %cst = arith.constant dense<0.000000e+00> : vector<8x512xf32>
    %2 = tpu.matmul %0, %1, %cst {dimension_numbers = #tpu.dot_dimension_numbers<[1], [0], [0], [1], [0, 0, 1, 1], [], []>} : vector<8x384xbf16>, vector<384x512xbf16>, vector<8x512xf32> -> vector<8x512xf32>
    %c0_3 = arith.constant 0 : index
    %c0_4 = arith.constant 0 : index
    %3 = vector.load %arg3[%c0_3, %c0_4] : memref<1x512xf32, #tpu.memory_space<vmem>>, vector<1x512xf32>
    %4 = vector.broadcast %3 : vector<1x512xf32> to vector<8x512xf32>
    %5 = arith.addf %2, %4 : vector<8x512xf32>
    %6 = math.tanh %5 : vector<8x512xf32>
    %7 = arith.truncf %6 : vector<8x512xf32> to vector<8x512xbf16>
    %c0_5 = arith.constant 0 : index
    %c0_6 = arith.constant 0 : index
    %8 = vector.load %arg4[%c0_5, %c0_6] : memref<512x512xbf16, #tpu.memory_space<vmem>>, vector<512x512xbf16>
    %cst_7 = arith.constant dense<0.000000e+00> : vector<8x512xf32>
    %9 = tpu.matmul %7, %8, %cst_7 {dimension_numbers = #tpu.dot_dimension_numbers<[1], [0], [0], [1], [0, 0, 1, 1], [], []>} : vector<8x512xbf16>, vector<512x512xbf16>, vector<8x512xf32> -> vector<8x512xf32>
    %c0_8 = arith.constant 0 : index
    %c0_9 = arith.constant 0 : index
    %10 = vector.load %arg5[%c0_8, %c0_9] : memref<1x512xf32, #tpu.memory_space<vmem>>, vector<1x512xf32>
    %11 = vector.broadcast %10 : vector<1x512xf32> to vector<8x512xf32>
    %12 = arith.addf %9, %11 : vector<8x512xf32>
    %13 = math.tanh %12 : vector<8x512xf32>
    %14 = arith.truncf %13 : vector<8x512xf32> to vector<8x512xbf16>
    %c0_10 = arith.constant 0 : index
    %c0_11 = arith.constant 0 : index
    %15 = vector.load %arg6[%c0_10, %c0_11] : memref<512x128xbf16, #tpu.memory_space<vmem>>, vector<512x128xbf16>
    %cst_12 = arith.constant dense<0.000000e+00> : vector<8x128xf32>
    %16 = tpu.matmul %14, %15, %cst_12 {dimension_numbers = #tpu.dot_dimension_numbers<[1], [0], [0], [1], [0, 0, 1, 1], [], []>} : vector<8x512xbf16>, vector<512x128xbf16>, vector<8x128xf32> -> vector<8x128xf32>
    %c0_13 = arith.constant 0 : index
    %c0_14 = arith.constant 0 : index
    %17 = vector.load %arg7[%c0_13, %c0_14] : memref<1x128xf32, #tpu.memory_space<vmem>>, vector<1x128xf32>
    %18 = vector.broadcast %17 : vector<1x128xf32> to vector<8x128xf32>
    %19 = arith.addf %16, %18 : vector<8x128xf32>
    %20 = math.tanh %19 : vector<8x128xf32>
    %c0_15 = arith.constant 0 : index
    %c0_16 = arith.constant 0 : index
    %21 = vector.load %arg8[%c0_15, %c0_16] : memref<8x128xf32, #tpu.memory_space<vmem>>, vector<8x128xf32>
    tpu.vector_store %arg8[%c0_15, %c0_16], %20 {strides = array<i32>} : memref<8x128xf32, #tpu.memory_space<vmem>>, vector<8x128xf32>,
    return
  }
  func.func @transform_0(%arg0: i32) -> (i32, i32) {
    %c0_i32 = arith.constant 0 : i32
    %c0_i32_0 = arith.constant 0 : i32
    return %arg0, %c0_i32 : i32, i32
  }
  func.func @transform_1(%arg0: i32) -> (i32, i32) {
    %c0_i32 = arith.constant 0 : i32
    %c0_i32_0 = arith.constant 0 : i32
    %c0_i32_1 = arith.constant 0 : i32
    return %c0_i32, %c0_i32_0 : i32, i32
  }
  func.func @transform_2(%arg0: i32) -> (i32, i32) {
    %c0_i32 = arith.constant 0 : i32
    %c0_i32_0 = arith.constant 0 : i32
    %c0_i32_1 = arith.constant 0 : i32
    return %c0_i32, %c0_i32_0 : i32, i32
  }
  func.func @transform_3(%arg0: i32) -> (i32, i32) {
    %c0_i32 = arith.constant 0 : i32
    %c0_i32_0 = arith.constant 0 : i32
    %c0_i32_1 = arith.constant 0 : i32
    return %c0_i32, %c0_i32_0 : i32, i32
  }
  func.func @transform_4(%arg0: i32) -> (i32, i32) {
    %c0_i32 = arith.constant 0 : i32
    %c0_i32_0 = arith.constant 0 : i32
    %c0_i32_1 = arith.constant 0 : i32
    return %c0_i32, %c0_i32_0 : i32, i32
  }
  func.func @transform_5(%arg0: i32) -> (i32, i32) {
    %c0_i32 = arith.constant 0 : i32
    %c0_i32_0 = arith.constant 0 : i32
    %c0_i32_1 = arith.constant 0 : i32
    return %c0_i32, %c0_i32_0 : i32, i32
  }
  func.func @transform_6(%arg0: i32) -> (i32, i32) {
    %c0_i32 = arith.constant 0 : i32
    %c0_i32_0 = arith.constant 0 : i32
    %c0_i32_1 = arith.constant 0 : i32
    return %c0_i32, %c0_i32_0 : i32, i32
  }
  func.func @transform_7(%arg0: i32) -> (i32, i32) {
    %c0_i32 = arith.constant 0 : i32
    %c0_i32_0 = arith.constant 0 : i32
    return %arg0, %c0_i32 : i32, i32
  }
}

</mosaic_0001>

<bundles_post_ra>
// kernel: tpu_custom_call.1
= control target key start
LH: loop header
LB: loop body
LE: loop exit
PB: predicated region body
PF: predicated region fallthrough
CT: control target
= control target key end

     0   :  { %12 = vsyncpa [#allocation3], 0  ;;  %s3146_s0 = inlined_call_operand.hbm [shape: bf16[8,384], index: 0, kind: input, shape index: {}]   ;;  %s3147_s1 = inlined_call_operand.hbm [shape: bf16[384,512], index: 1, kind: input, shape index: {}]   ;;  %s3148_s2 = inlined_call_operand.hbm [shape: f32[1,512], index: 2, kind: input, shape index: {}]   ;;  %s3149_s3 = inlined_call_operand.hbm [shape: bf16[512,512], index: 3, kind: input, shape index: {}]   ;;  %s3150_s4 = inlined_call_operand.vmem [shape: f32[1,512], index: 4, kind: input, shape index: {}]   ;;  %s3151_s5 = inlined_call_operand.hbm [shape: bf16[512,128], index: 5, kind: input, shape index: {}]   ;;  %s3152_s6 = inlined_call_operand.vmem [shape: f32[1,128], index: 6, kind: input, shape index: {}]   ;;  %s3153_s7 = inlined_call_operand.hbm [shape: f32[8,128], index: 7, kind: output, shape index: {}]  }
   0x1   :  { %13 = vsyncpa [#allocation6], 0 }
   0x2   :  { %14 = vsyncpa [#allocation9], 0 }
   0x3   :  { %15 = vsyncpa [#allocation4], 0  ;;  %s3031_s24 = smov [#allocation5]  }
   0x4   :  { %s31_s25 = sshll.u32 %s3031_s24, 4  ;;  %s32_s25 = int_to_ptr.vmem [resolvable:$true] %s31_s25 }
   0x5   :  { %s2911_s26 = scalar_lea.vmem %s32_s25, 12288  ;;  %p2916_p1 = scmp.lt.s32.totalorder %s32_s25, %s32_s25 }
   0x6   :  { %p2912_p0 = scmp.ne.s32.totalorder %s32_s25, %s2911_s26  ;;  %p2917_p2 = scmp.lt.s32.totalorder %s2911_s26, %s2911_s26 }
   0x8   :  { %p2918_p3 = por %p2917_p2, %p2916_p1 }
   0xa   :  { %p2919_p4 = pnand %p2918_p3, %p2912_p0 }
   0xc   :  { %2922 = shalt.err (!%p2919_p4)
}
   0xd   :  { %s3032_s27 = smov 256   ;;  %s3033_s28 = smov 16  }
   0xe   :  { %37 = dma.hbm_to_vmem [thread:$0]  %s3147_s1, 12288, %s32_s25, [#allocation6], %s3032_s27, %s3032_s27, %s3033_s28  }
   0xf   :  { %s3034_s8 = smov [#allocation8]   ;;  %s3035_s10 = smov [#allocation2]  }
  0x10   :  { %s53_s9 = sshll.u32 %s3034_s8, 4  ;;  %s22_s11 = sshll.u32 %s3035_s10, 4  ;;  %s54_s9 = int_to_ptr.vmem [resolvable:$true] %s53_s9  ;;  %s23_s11 = int_to_ptr.vmem [resolvable:$true] %s22_s11 }
  0x11   :  { %s2931_s12 = scalar_lea.vmem %s54_s9, 16384  ;;  %p2936_p6 = scmp.lt.s32.totalorder %s54_s9, %s54_s9 }
  0x12   :  { %p2932_p5 = scmp.ne.s32.totalorder %s54_s9, %s2931_s12  ;;  %p2937_p7 = scmp.lt.s32.totalorder %s2931_s12, %s2931_s12 }
  0x14   :  { %p2938_p8 = por %p2937_p7, %p2936_p6 }
  0x16   :  { %p2939_p9 = pnand %p2938_p8, %p2932_p5 }
  0x18   :  { %2942 = shalt.err (!%p2939_p9)
}
  0x19   :  { %59 = dma.hbm_to_vmem [thread:$0]  %s3149_s3, 16384, %s54_s9, [#allocation9], %s3032_s27, %s3032_s27, %s3033_s28  }
  0x1a   :  { %s2951_s15 = scalar_lea.vmem %s23_s11, 192  ;;  %p2956_p11 = scmp.lt.s32.totalorder %s23_s11, %s23_s11 }
  0x1b   :  { %p2952_p10 = scmp.ne.s32.totalorder %s23_s11, %s2951_s15  ;;  %p2957_p12 = scmp.lt.s32.totalorder %s2951_s15, %s2951_s15 }
  0x1d   :  { %p2958_p13 = por %p2957_p12, %p2956_p11 }
  0x1f   :  { %p2959_p0 = pnand %p2958_p13, %p2952_p10 }
  0x21   :  { %2962 = shalt.err (!%p2959_p0)
}
  0x22   :  { %25 = dma.hbm_to_vmem [thread:$0]  %s3146_s0, 192, %s23_s11, [#allocation3]  }
  0x23   :  { %s3036_s17 = smov [#allocation7]   ;;  %s3037_s19 = smov [#allocation10]  }
  0x24   :  { %s44_s18 = sshll.u32 %s3036_s17, 4  ;;  %s67_s20 = sshll.u32 %s3037_s19, 4  ;;  %s45_s18 = int_to_ptr.vmem [resolvable:$true] %s44_s18  ;;  %s68_s20 = int_to_ptr.vmem [resolvable:$true] %s67_s20 }
  0x25   :  { %s2971_s21 = scalar_lea.vmem %s45_s18, 64  ;;  %p2976_p2 = scmp.lt.s32.totalorder %s45_s18, %s45_s18 }
  0x26   :  { %p2972_p1 = scmp.ne.s32.totalorder %s45_s18, %s2971_s21  ;;  %p2977_p3 = scmp.lt.s32.totalorder %s2971_s21, %s2971_s21 }
  0x28   :  { %p2978_p4 = por %p2977_p3, %p2976_p2 }
  0x2a   :  { %p2979_p5 = pnand %p2978_p4, %p2972_p1 }
  0x2c   :  { %2982 = shalt.err (!%p2979_p5)
}
  0x2d   :  { %47 = dma.hbm_to_vmem [thread:$0]  %s3148_s2, 64, %s45_s18, [#allocation6]  }
  0x2e   :  { %s2991_s23 = scalar_lea.vmem %s68_s20, 4096  ;;  %p2996_p7 = scmp.lt.s32.totalorder %s68_s20, %s68_s20 }
  0x2f   :  { %p2992_p6 = scmp.ne.s32.totalorder %s68_s20, %s2991_s23  ;;  %p2997_p8 = scmp.lt.s32.totalorder %s2991_s23, %s2991_s23 }
  0x31   :  { %p2998_p9 = por %p2997_p8, %p2996_p7 }
  0x33   :  { %p2999_p10 = pnand %p2998_p9, %p2992_p6 }
  0x35   :  { %3002 = shalt.err (!%p2999_p10)
}
  0x36   :  { %s3038_s0 = smov 64   ;;  %s3039_s24 = smov 4  }
  0x37   :  { %73 = dma.hbm_to_vmem [thread:$0]  %s3151_s5, 4096, %s68_s20, [#allocation9], %s3038_s0, %s3038_s0, %s3039_s24  }
  0x38   :  { %3023 = dma.done.wait [#allocation3], 192  }
  0x39   :  { %3024 = vsyncadd [#allocation3], 4294967104 }
  0x3a   :  { %3025 = dma.done.wait [#allocation6], 12352  }
  0x3b   :  { %3026 = vsyncadd [#allocation6], 4294954944 }
  0x3c   :  { %3027 = dma.done.wait [#allocation9], 20480  }
  0x3d   :  { %3028 = vsyncadd [#allocation9], 4294946816  ;;  %v3040_v0 = vmov 0   ;;  %v2514_v1 = vld [vmem:[#allocation5 + $0xe4] ss:$16 sps:$4 sm:$0xff]   ;;  %s3041_s28 = smov [#allocation11]  }
  0x3e   :  { %776 = vmatprep.mubr.bf16.mxu1 %v3040_v0  ;;  %v2516_v2 = vld [vmem:[#allocation5 + $0x2e4] ss:$16 sps:$4 sm:$0xff]   ;;  %703 = vmatprep.subr.bf16.mxu0 %v2514_v1  ;;  %v2518_v3 = vld [vmem:[#allocation5 + $0xe0] ss:$16 sps:$4 sm:$0xff]   ;;  %v2567_v34 = vld [vmem:[#allocation5 + $0xec] ss:$16 sps:$4 sm:$0xff]  }
  0x3f   :  { %v2519_v4 = vld [vmem:[#allocation5 + $0x2e0] ss:$16 sps:$4 sm:$0xff]   ;;  %744 = vmatprep.subr.bf16.mxu1 %v2516_v2  ;;  %v2520_v5 = vld [vmem:[#allocation5 + $0xc4] ss:$16 sps:$4 sm:$0xff]   ;;  %704 = vmatpush1.bf16.msra.mxu0 %v2518_v3  ;;  %v3098_v35 = vld [vmem:[#allocation2 + $0x8] ss:$0 sps:$4 sm:$0xff]  }
  0x40   :  { %745 = vmatpush1.bf16.msra.mxu1 %v2519_v4  ;;  %v2522_v6 = vld [vmem:[#allocation5 + $0x2c4] ss:$16 sps:$4 sm:$0xff]   ;;  %v2524_v7 = vld [vmem:[#allocation5 + $0xc0] ss:$16 sps:$4 sm:$0xff]   ;;  %705 = vmatprep.subr.bf16.mxu0 %v2520_v5  ;;  %v2565_v36 = vld [vmem:[#allocation5 + $0xe8] ss:$16 sps:$4 sm:$0xff]  }
  0x41   :  { %v2525_v8 = vld [vmem:[#allocation5 + $0x2c0] ss:$16 sps:$4 sm:$0xff]   ;;  %746 = vmatprep.subr.bf16.mxu1 %v2522_v6  ;;  %v2526_v9 = vld [vmem:[#allocation5 + $0xa4] ss:$16 sps:$4 sm:$0xff]   ;;  %v2573_v39 = vld [vmem:[#allocation5 + $0xcc] ss:$16 sps:$4 sm:$0xff]  }
  0x42   :  { %v2528_v10 = vld [vmem:[#allocation5 + $0x2a4] ss:$16 sps:$4 sm:$0xff]   ;;  %v2530_v11 = vld [vmem:[#allocation5 + $0xa0] ss:$16 sps:$4 sm:$0xff]   ;;  %v2571_v40 = vld [vmem:[#allocation5 + $0xc8] ss:$16 sps:$4 sm:$0xff]  }
  0x43   :  { %v2531_v12 = vld [vmem:[#allocation5 + $0x2a0] ss:$16 sps:$4 sm:$0xff]   ;;  %706 = vmatpush1.bf16.msra.mxu0 %v2524_v7  ;;  %v2532_v13 = vld [vmem:[#allocation5 + $0x84] ss:$16 sps:$4 sm:$0xff]   ;;  %v2579_v43 = vld [vmem:[#allocation5 + $0xac] ss:$16 sps:$4 sm:$0xff]  }
  0x44   :  { %747 = vmatpush1.bf16.msra.mxu1 %v2525_v8  ;;  %707 = vmatprep.subr.bf16.mxu0 %v2526_v9  ;;  %v2534_v14 = vld [vmem:[#allocation5 + $0x284] ss:$16 sps:$4 sm:$0xff]   ;;  %v2536_v15 = vld [vmem:[#allocation5 + $0x80] ss:$16 sps:$4 sm:$0xff]   ;;  %v2577_v44 = vld [vmem:[#allocation5 + $0xa8] ss:$16 sps:$4 sm:$0xff]  }
  0x45   :  { %748 = vmatprep.subr.bf16.mxu1 %v2528_v10  ;;  %v2537_v16 = vld [vmem:[#allocation5 + $0x280] ss:$16 sps:$4 sm:$0xff]   ;;  %v2538_v17 = vld [vmem:[#allocation5 + $0x64] ss:$16 sps:$4 sm:$0xff]   ;;  %v2585_v47 = vld [vmem:[#allocation5 + $0x8c] ss:$16 sps:$4 sm:$0xff]  }
  0x46   :  { %v2540_v18 = vld [vmem:[#allocation5 + $0x264] ss:$16 sps:$4 sm:$0xff]   ;;  %v2542_v19 = vld [vmem:[#allocation5 + $0x60] ss:$16 sps:$4 sm:$0xff]   ;;  %v2583_v48 = vld [vmem:[#allocation5 + $0x88] ss:$16 sps:$4 sm:$0xff]  }
  0x47   :  { %708 = vmatpush1.bf16.msra.mxu0 %v2530_v11  ;;  %v2543_v20 = vld [vmem:[#allocation5 + $0x260] ss:$16 sps:$4 sm:$0xff]   ;;  %v2544_v21 = vld [vmem:[#allocation5 + $0x44] ss:$16 sps:$4 sm:$0xff]   ;;  %v2591_v53 = vld [vmem:[#allocation5 + $0x6c] ss:$16 sps:$4 sm:$0xff]  }
  0x48   :  { %749 = vmatpush1.bf16.msra.mxu1 %v2531_v12  ;;  %709 = vmatprep.subr.bf16.mxu0 %v2532_v13  ;;  %v2546_v22 = vld [vmem:[#allocation5 + $0x244] ss:$16 sps:$4 sm:$0xff]   ;;  %v2548_v23 = vld [vmem:[#allocation5 + $0x40] ss:$16 sps:$4 sm:$0xff]   ;;  %v2589_v54 = vld [vmem:[#allocation5 + $0x68] ss:$16 sps:$4 sm:$0xff]  }
  0x49   :  { %750 = vmatprep.subr.bf16.mxu1 %v2534_v14  ;;  %v2549_v24 = vld [vmem:[#allocation5 + $0x240] ss:$16 sps:$4 sm:$0xff]   ;;  %v2550_v25 = vld [vmem:[#allocation5 + $0x24] ss:$16 sps:$4 sm:$0xff]   ;;  %v2597_v57 = vld [vmem:[#allocation5 + $0x4c] ss:$16 sps:$4 sm:$0xff]  }
  0x4a   :  { %v2552_v26 = vld [vmem:[#allocation5 + $0x224] ss:$16 sps:$4 sm:$0xff]   ;;  %v2554_v27 = vld [vmem:[#allocation5 + $0x20] ss:$16 sps:$4 sm:$0xff]   ;;  %v2595_v58 = vld [vmem:[#allocation5 + $0x48] ss:$16 sps:$4 sm:$0xff]  }
  0x4b   :  { %710 = vmatpush1.bf16.msra.mxu0 %v2536_v15  ;;  %v2555_v28 = vld [vmem:[#allocation5 + $0x220] ss:$16 sps:$4 sm:$0xff]   ;;  %v2556_v29 = vld [vmem:[#allocation5 + $0x4] ss:$16 sps:$4 sm:$0xff]   ;;  %v2603_v61 = vld [vmem:[#allocation5 + $0x2c] ss:$16 sps:$4 sm:$0xff]  }
  0x4c   :  { %751 = vmatpush1.bf16.msra.mxu1 %v2537_v16  ;;  %711 = vmatprep.subr.bf16.mxu0 %v2538_v17  ;;  %v2558_v30 = vld [vmem:[#allocation5 + $0x204] ss:$16 sps:$4 sm:$0xff]   ;;  %v2560_v31 = vld [vmem:[#allocation5] ss:$16 sps:$4 sm:$0xff]   ;;  %v2601_v62 = vld [vmem:[#allocation5 + $0x28] ss:$16 sps:$4 sm:$0xff]  }
  0x4d   :  { %752 = vmatprep.subr.bf16.mxu1 %v2540_v18  ;;  %v2561_v32 = vld [vmem:[#allocation5 + $0x200] ss:$16 sps:$4 sm:$0xff]   ;;  %v2562_v33 = vld [vmem:[#allocation5 + $0x1e4] ss:$16 sps:$4 sm:$0xff]   ;;  %v2609_v2 = vld [vmem:[#allocation5 + $0xc] ss:$16 sps:$4 sm:$0xff]  }
  0x4e   :  { %v2568_v37 = vld [vmem:[#allocation5 + $0x1e0] ss:$16 sps:$4 sm:$0xff]   ;;  %v2569_v38 = vld [vmem:[#allocation5 + $0x1c4] ss:$16 sps:$4 sm:$0xff]   ;;  %v2607_v3 = vld [vmem:[#allocation5 + $0x8] ss:$16 sps:$4 sm:$0xff]  }
  0x4f   :  { %712 = vmatpush1.bf16.msra.mxu0 %v2542_v19  ;;  %v2574_v41 = vld [vmem:[#allocation5 + $0x1c0] ss:$16 sps:$4 sm:$0xff]   ;;  %v2575_v42 = vld [vmem:[#allocation5 + $0x1a4] ss:$16 sps:$4 sm:$0xff]   ;;  %v2615_v5 = vld [vmem:[#allocation5 + $0x1ec] ss:$16 sps:$4 sm:$0xff]  }
  0x50   :  { %753 = vmatpush1.bf16.msra.mxu1 %v2543_v20  ;;  %713 = vmatprep.subr.bf16.mxu0 %v2544_v21  ;;  %v2580_v45 = vld [vmem:[#allocation5 + $0x1a0] ss:$16 sps:$4 sm:$0xff]   ;;  %v2581_v46 = vld [vmem:[#allocation5 + $0x184] ss:$16 sps:$4 sm:$0xff]   ;;  %v2618_v6 = vld [vmem:[#allocation5 + $0x2ec] ss:$16 sps:$4 sm:$0xff]  }
  0x51   :  { %754 = vmatprep.subr.bf16.mxu1 %v2546_v22  ;;  %v92_v49 = vld [vmem:[#allocation2] sm:$0xff]  ;;  %v2586_v50 = vld [vmem:[#allocation5 + $0x180] ss:$16 sps:$4 sm:$0xff]   ;;  %v2621_v10 = vld [vmem:[#allocation5 + $0x1cc] ss:$16 sps:$4 sm:$0xff]   ;;  %s2188_s29 = sshll.u32 %s3041_s28, 4  ;;  %s2189_s29 = int_to_ptr.vmem [resolvable:$true] %s2188_s29 }
  0x52   :  { %v2587_v51 = vld [vmem:[#allocation5 + $0x164] ss:$16 sps:$4 sm:$0xff]   ;;  %v2200_v52 = vcombine.high %v92_v49, %v92_v49  ;;  %v2592_v55 = vld [vmem:[#allocation5 + $0x160] ss:$16 sps:$4 sm:$0xff]   ;;  %v3101_v7 = vcombine.low %v92_v49, %v92_v49  ;;  %v2613_v8 = vld [vmem:[#allocation5 + $0x1e8] ss:$16 sps:$4 sm:$0xff]   ;;  %p3008_p12 = scmp.lt.s32.totalorder %s2189_s29, %s2189_s29 }
  0x53   :  { %714 = vmatpush1.bf16.msra.mxu0 %v2548_v23  ;;  %v2593_v56 = vld [vmem:[#allocation5 + $0x144] ss:$16 sps:$4 sm:$0xff]   ;;  %v2598_v59 = vld [vmem:[#allocation5 + $0x140] ss:$16 sps:$4 sm:$0xff]   ;;  %v2616_v9 = vld [vmem:[#allocation5 + $0x2e8] ss:$16 sps:$4 sm:$0xff]  }
  0x54   :  { %755 = vmatpush1.bf16.msra.mxu1 %v2549_v24  ;;  %715 = vmatprep.subr.bf16.mxu0 %v2550_v25  ;;  %v2599_v60 = vld [vmem:[#allocation5 + $0x124] ss:$16 sps:$4 sm:$0xff]   ;;  %v2604_v63 = vld [vmem:[#allocation5 + $0x120] ss:$16 sps:$4 sm:$0xff]   ;;  %v2624_v11 = vld [vmem:[#allocation5 + $0x2cc] ss:$16 sps:$4 sm:$0xff]  }
  0x55   :  { %756 = vmatprep.subr.bf16.mxu1 %v2552_v26  ;;  %735 = vmatprep.mubr.bf16.mxu0 %v2200_v52  ;;  %v2605_v1 = vld [vmem:[#allocation5 + $0x104] ss:$16 sps:$4 sm:$0xff]   ;;  %v2610_v4 = vld [vmem:[#allocation5 + $0x100] ss:$16 sps:$4 sm:$0xff]   ;;  %v2619_v12 = vld [vmem:[#allocation5 + $0x1c8] ss:$16 sps:$4 sm:$0xff]  }
  0x56   :  { %v2622_v13 = vld [vmem:[#allocation5 + $0x2c8] ss:$16 sps:$4 sm:$0xff]   ;;  %v2627_v14 = vld [vmem:[#allocation5 + $0x1ac] ss:$16 sps:$4 sm:$0xff]   ;;  %s3003_s30 = scalar_lea.vmem %s2189_s29, 128 }
  0x57   :  { %716 = vmatpush1.bf16.msra.mxu0 %v2554_v27  ;;  %v2630_v15 = vld [vmem:[#allocation5 + $0x2ac] ss:$16 sps:$4 sm:$0xff]   ;;  %v2625_v16 = vld [vmem:[#allocation5 + $0x1a8] ss:$16 sps:$4 sm:$0xff]   ;;  %p3004_p11 = scmp.ne.s32.totalorder %s2189_s29, %s3003_s30  ;;  %p3009_p13 = scmp.lt.s32.totalorder %s3003_s30, %s3003_s30 }
  0x58   :  { %757 = vmatpush1.bf16.msra.mxu1 %v2555_v28  ;;  %717 = vmatprep.subr.bf16.mxu0 %v2556_v29  ;;  %v2628_v17 = vld [vmem:[#allocation5 + $0x2a8] ss:$16 sps:$4 sm:$0xff]   ;;  %v2633_v18 = vld [vmem:[#allocation5 + $0x18c] ss:$16 sps:$4 sm:$0xff]  }
  0x59   :  { %758 = vmatprep.subr.bf16.mxu1 %v2558_v30  ;;  %v2636_v19 = vld [vmem:[#allocation5 + $0x28c] ss:$16 sps:$4 sm:$0xff]   ;;  %v2631_v20 = vld [vmem:[#allocation5 + $0x188] ss:$16 sps:$4 sm:$0xff]   ;;  %p3010_p0 = por %p3009_p13, %p3008_p12 }
  0x5a   :  { %v2634_v21 = vld [vmem:[#allocation5 + $0x288] ss:$16 sps:$4 sm:$0xff]   ;;  %v2639_v22 = vld [vmem:[#allocation5 + $0x16c] ss:$16 sps:$4 sm:$0xff]  }
  0x5b   :  { %718 = vmatpush1.bf16.msra.mxu0 %v2560_v31  ;;  %v2642_v23 = vld [vmem:[#allocation5 + $0x26c] ss:$16 sps:$4 sm:$0xff]   ;;  %v2637_v24 = vld [vmem:[#allocation5 + $0x168] ss:$16 sps:$4 sm:$0xff]   ;;  %p3011_p1 = pnand %p3010_p0, %p3004_p11 }
  0x5c   :  { %759 = vmatpush1.bf16.msra.mxu1 %v2561_v32  ;;  %719 = vmatprep.subr.bf16.mxu0 %v2562_v33  ;;  %v2640_v25 = vld [vmem:[#allocation5 + $0x268] ss:$16 sps:$4 sm:$0xff]   ;;  %v2645_v26 = vld [vmem:[#allocation5 + $0x14c] ss:$16 sps:$4 sm:$0xff]  }
  0x5d   :  { %785 = vmatprep.subr.bf16.mxu1 %v2567_v34  ;;  %v2648_v27 = vld [vmem:[#allocation5 + $0x24c] ss:$16 sps:$4 sm:$0xff]   ;;  %v2646_v28 = vld [vmem:[#allocation5 + $0x248] ss:$16 sps:$4 sm:$0xff]  }
  0x5e   :  { %v2651_v29 = vld [vmem:[#allocation5 + $0x12c] ss:$16 sps:$4 sm:$0xff]   ;;  %v2649_v31 = vld [vmem:[#allocation5 + $0x128] ss:$16 sps:$4 sm:$0xff]  }
  0x5f   :  { %777 = vmatmul.mubr.bf16.vlgmr.msra.gmra.mxu1 %v3098_v35  ;;  %720 = vmatpush2.bf16.msra.mxu0 %v2568_v37  ;;  %v2654_v30 = vld [vmem:[#allocation5 + $0x22c] ss:$16 sps:$4 sm:$0xff]   ;;  %v2652_v32 = vld [vmem:[#allocation5 + $0x228] ss:$16 sps:$4 sm:$0xff]  }
  0x60   :  { %786 = vmatpush1.bf16.msra.mxu1 %v2565_v36  ;;  %721 = vmatprep.subr.bf16.mxu0 %v2569_v38  ;;  %v2657_v33 = vld [vmem:[#allocation5 + $0x10c] ss:$16 sps:$4 sm:$0xff]   ;;  %v2655_v36 = vld [vmem:[#allocation5 + $0x108] ss:$16 sps:$4 sm:$0xff]  }
  0x61   :  { %787 = vmatprep.subr.bf16.mxu1 %v2573_v39  ;;  %817 = vmatprep.mubr.bf16.mxu1 %v2200_v52  ;;  %v2660_v34 = vld [vmem:[#allocation5 + $0x20c] ss:$16 sps:$4 sm:$0xff]   ;;  %v2658_v37 = vld [vmem:[#allocation5 + $0x208] ss:$16 sps:$4 sm:$0xff]   ;;  %v2661_v39 = vld [vmem:[#allocation8 + $0xe0] ss:$16 sps:$4 sm:$0xff]  }
  0x62   :  { %v2663_v38 = vld [vmem:[#allocation8 + $0xe4] ss:$16 sps:$4 sm:$0xff]  }
  0x63   :  { %722 = vmatpush2.bf16.msra.mxu0 %v2574_v41  ;;  %v2664_v41 = vld [vmem:[#allocation8 + $0xc0] ss:$16 sps:$4 sm:$0xff]   ;;  %v2696_v49 = vld [vmem:[#allocation8 + $0x2c4] ss:$16 sps:$4 sm:$0xff]  }
  0x64   :  { %788 = vmatpush1.bf16.msra.mxu1 %v2571_v40  ;;  %723 = vmatprep.subr.bf16.mxu0 %v2575_v42  ;;  %v2666_v40 = vld [vmem:[#allocation8 + $0xc4] ss:$16 sps:$4 sm:$0xff]  }
  0x65   :  { %789 = vmatprep.subr.bf16.mxu1 %v2579_v43  ;;  %v2669_v42 = vld [vmem:[#allocation8 + $0xa4] ss:$16 sps:$4 sm:$0xff]   ;;  %v2667_v43 = vld [vmem:[#allocation8 + $0xa0] ss:$16 sps:$4 sm:$0xff]  }
  0x66   :  { %v2702_v52 = vld [vmem:[#allocation8 + $0x2a4] ss:$16 sps:$4 sm:$0xff]  }
  0x67   :  { %724 = vmatpush2.bf16.msra.mxu0 %v2580_v45  ;;  %v2670_v45 = vld [vmem:[#allocation8 + $0x80] ss:$16 sps:$4 sm:$0xff]  }
  0x68   :  { %790 = vmatpush1.bf16.msra.mxu1 %v2577_v44  ;;  %725 = vmatprep.subr.bf16.mxu0 %v2581_v46  ;;  %v2672_v44 = vld [vmem:[#allocation8 + $0x84] ss:$16 sps:$4 sm:$0xff]   ;;  %v2688_v46 = vld [vmem:[#allocation8 + $0x2e0] ss:$16 sps:$4 sm:$0xff]  }
  0x69   :  { %791 = vmatprep.subr.bf16.mxu1 %v2585_v47  ;;  %v2690_v47 = vld [vmem:[#allocation8 + $0x2e4] ss:$16 sps:$4 sm:$0xff]  }
  0x6b   :  { %726 = vmatpush2.bf16.msra.mxu0 %v2586_v50  ;;  %v2673_v50 = vld [vmem:[#allocation8 + $0x60] ss:$16 sps:$4 sm:$0xff]  }
  0x6c   :  { %792 = vmatpush1.bf16.msra.mxu1 %v2583_v48  ;;  %727 = vmatprep.subr.bf16.mxu0 %v2587_v51  ;;  %v2675_v48 = vld [vmem:[#allocation8 + $0x64] ss:$16 sps:$4 sm:$0xff]  }
  0x6d   :  { %793 = vmatprep.subr.bf16.mxu1 %v2591_v53  ;;  %v2678_v51 = vld [vmem:[#allocation8 + $0x44] ss:$16 sps:$4 sm:$0xff]   ;;  %v2700_v53 = vld [vmem:[#allocation8 + $0x2a0] ss:$16 sps:$4 sm:$0xff]  }
  0x6f   :  { %728 = vmatpush2.bf16.msra.mxu0 %v2592_v55  ;;  %v2681_v55 = vld [vmem:[#allocation8 + $0x24] ss:$16 sps:$4 sm:$0xff]  }
  0x70   :  { %794 = vmatpush1.bf16.msra.mxu1 %v2589_v54  ;;  %729 = vmatprep.subr.bf16.mxu0 %v2593_v56  ;;  %v2676_v54 = vld [vmem:[#allocation8 + $0x40] ss:$16 sps:$4 sm:$0xff]  }
  0x71   :  { %795 = vmatprep.subr.bf16.mxu1 %v2597_v57  ;;  %v2679_v56 = vld [vmem:[#allocation8 + $0x20] ss:$16 sps:$4 sm:$0xff]   ;;  %v2684_v57 = vld [vmem:[#allocation8 + $0x4] ss:$16 sps:$4 sm:$0xff]  }
  0x73   :  { %730 = vmatpush2.bf16.msra.mxu0 %v2598_v59  ;;  %v2687_v59 = vld [vmem:[#allocation8 + $0x1e4] ss:$16 sps:$4 sm:$0xff]  }
  0x74   :  { %796 = vmatpush1.bf16.msra.mxu1 %v2595_v58  ;;  %731 = vmatprep.subr.bf16.mxu0 %v2599_v60  ;;  %v2682_v58 = vld [vmem:[#allocation8] ss:$16 sps:$4 sm:$0xff]  }
  0x75   :  { %797 = vmatprep.subr.bf16.mxu1 %v2603_v61  ;;  %v2685_v60 = vld [vmem:[#allocation8 + $0x1e0] ss:$16 sps:$4 sm:$0xff]   ;;  %v2693_v61 = vld [vmem:[#allocation8 + $0x1c4] ss:$16 sps:$4 sm:$0xff]  }
  0x77   :  { %732 = vmatpush2.bf16.msra.mxu0 %v2604_v63  ;;  %v2708_v63 = vld [vmem:[#allocation8 + $0x284] ss:$16 sps:$4 sm:$0xff]  }
  0x78   :  { %798 = vmatpush1.bf16.msra.mxu1 %v2601_v62  ;;  %733 = vmatprep.subr.bf16.mxu0 %v2605_v1  ;;  %v2691_v62 = vld [vmem:[#allocation8 + $0x1c0] ss:$16 sps:$4 sm:$0xff]   ;;  %v2699_v1 = vld [vmem:[#allocation8 + $0x1a4] ss:$16 sps:$4 sm:$0xff]  }
  0x79   :  { %799 = vmatprep.subr.bf16.mxu1 %v2609_v2  ;;  %v2706_v2 = vld [vmem:[#allocation8 + $0x280] ss:$16 sps:$4 sm:$0xff]  }
  0x7b   :  { %734 = vmatpush2.bf16.msra.mxu0 %v2610_v4  ;;  %v2714_v4 = vld [vmem:[#allocation8 + $0x264] ss:$16 sps:$4 sm:$0xff]  }
  0x7c   :  { %800 = vmatpush1.bf16.msra.mxu1 %v2607_v3  ;;  %826 = vmatprep.subr.bf16.mxu0 %v2618_v6  ;;  %v2697_v3 = vld [vmem:[#allocation8 + $0x1a0] ss:$16 sps:$4 sm:$0xff]  }
  0x7d   :  { %801 = vmatprep.subr.bf16.mxu1 %v2615_v5  ;;  %v2705_v5 = vld [vmem:[#allocation8 + $0x184] ss:$16 sps:$4 sm:$0xff]   ;;  %v2712_v6 = vld [vmem:[#allocation8 + $0x260] ss:$16 sps:$4 sm:$0xff]  }
  0x7e   :  { %736 = vmatmul.mubr.bf16.vlgmr.msra.gmra.mxu0 %v3101_v7 }
  0x7f   :  { %827 = vmatpush1.bf16.msra.mxu0 %v2616_v9  ;;  %858 = vmatprep.mubr.bf16.mxu0 %v3040_v0  ;;  %v2643_v0 = vld [vmem:[#allocation5 + $0x148] ss:$16 sps:$4 sm:$0xff]  }
  0x80   :  { %802 = vmatpush2.bf16.msra.mxu1 %v2613_v8  ;;  %828 = vmatprep.subr.bf16.mxu0 %v2624_v11  ;;  %v2720_v8 = vld [vmem:[#allocation8 + $0x244] ss:$16 sps:$4 sm:$0xff]   ;;  %v2709_v11 = vld [vmem:[#allocation8 + $0x160] ss:$16 sps:$4 sm:$0xff]  }
  0x81   :  { %803 = vmatprep.subr.bf16.mxu1 %v2621_v10  ;;  %v2711_v9 = vld [vmem:[#allocation8 + $0x164] ss:$16 sps:$4 sm:$0xff]   ;;  %v2718_v10 = vld [vmem:[#allocation8 + $0x240] ss:$16 sps:$4 sm:$0xff]  }
  0x83   :  { %829 = vmatpush1.bf16.msra.mxu0 %v2622_v13  ;;  %v2717_v13 = vld [vmem:[#allocation8 + $0x144] ss:$16 sps:$4 sm:$0xff]  }
  0x84   :  { %804 = vmatpush2.bf16.msra.mxu1 %v2619_v12  ;;  %830 = vmatprep.subr.bf16.mxu0 %v2630_v15  ;;  %v2726_v12 = vld [vmem:[#allocation8 + $0x224] ss:$16 sps:$4 sm:$0xff]   ;;  %v2715_v15 = vld [vmem:[#allocation8 + $0x140] ss:$16 sps:$4 sm:$0xff]  }
  0x85   :  { %805 = vmatprep.subr.bf16.mxu1 %v2627_v14  ;;  %v2724_v14 = vld [vmem:[#allocation8 + $0x220] ss:$16 sps:$4 sm:$0xff]  }
  0x87   :  { %831 = vmatpush1.bf16.msra.mxu0 %v2628_v17  ;;  %v2723_v17 = vld [vmem:[#allocation8 + $0x124] ss:$16 sps:$4 sm:$0xff]  }
  0x88   :  { %806 = vmatpush2.bf16.msra.mxu1 %v2625_v16  ;;  %832 = vmatprep.subr.bf16.mxu0 %v2636_v19  ;;  %v2732_v16 = vld [vmem:[#allocation8 + $0x204] ss:$16 sps:$4 sm:$0xff]   ;;  %v2721_v19 = vld [vmem:[#allocation8 + $0x120] ss:$16 sps:$4 sm:$0xff]  }
  0x89   :  { %807 = vmatprep.subr.bf16.mxu1 %v2633_v18  ;;  %v2730_v18 = vld [vmem:[#allocation8 + $0x200] ss:$16 sps:$4 sm:$0xff]  }
  0x8b   :  { %833 = vmatpush1.bf16.msra.mxu0 %v2634_v21  ;;  %v2729_v21 = vld [vmem:[#allocation8 + $0x104] ss:$16 sps:$4 sm:$0xff]  }
  0x8c   :  { %808 = vmatpush2.bf16.msra.mxu1 %v2631_v20  ;;  %834 = vmatprep.subr.bf16.mxu0 %v2642_v23  ;;  %v2735_v20 = vld [vmem:[#allocation8 + $0x3e4] ss:$16 sps:$4 sm:$0xff]   ;;  %v2727_v23 = vld [vmem:[#allocation8 + $0x100] ss:$16 sps:$4 sm:$0xff]  }
  0x8d   :  { %809 = vmatprep.subr.bf16.mxu1 %v2639_v22  ;;  %v2733_v22 = vld [vmem:[#allocation8 + $0x3e0] ss:$16 sps:$4 sm:$0xff]  }
  0x8f   :  { %835 = vmatpush1.bf16.msra.mxu0 %v2640_v25  ;;  %v2741_v25 = vld [vmem:[#allocation8 + $0x3c4] ss:$16 sps:$4 sm:$0xff]  }
  0x90   :  { %810 = vmatpush2.bf16.msra.mxu1 %v2637_v24  ;;  %836 = vmatprep.subr.bf16.mxu0 %v2648_v27  ;;  %v2739_v24 = vld [vmem:[#allocation8 + $0x3c0] ss:$16 sps:$4 sm:$0xff]  }
  0x91   :  { %811 = vmatprep.subr.bf16.mxu1 %v2645_v26  ;;  %v2738_v26 = vld [vmem:[#allocation8 + $0xec] ss:$16 sps:$4 sm:$0xff]   ;;  %v2745_v27 = vld [vmem:[#allocation8 + $0x3a0] ss:$16 sps:$4 sm:$0xff]  }
  0x93   :  { %837 = vmatpush1.bf16.msra.mxu0 %v2646_v28  ;;  %v2753_v28 = vld [vmem:[#allocation8 + $0x384] ss:$16 sps:$4 sm:$0xff]  }
  0x94   :  { %812 = vmatpush2.bf16.msra.mxu1 %v2643_v0  ;;  %838 = vmatprep.subr.bf16.mxu0 %v2654_v30  ;;  %v2747_v0 = vld [vmem:[#allocation8 + $0x3a4] ss:$16 sps:$4 sm:$0xff]  }
  0x95   :  { %813 = vmatprep.subr.bf16.mxu1 %v2651_v29  ;;  %v2751_v29 = vld [vmem:[#allocation8 + $0x380] ss:$16 sps:$4 sm:$0xff]   ;;  %v2759_v30 = vld [vmem:[#allocation8 + $0x364] ss:$16 sps:$4 sm:$0xff]  }
  0x97   :  { %839 = vmatpush1.bf16.msra.mxu0 %v2652_v32  ;;  %v2765_v32 = vld [vmem:[#allocation8 + $0x344] ss:$16 sps:$4 sm:$0xff]  }
  0x98   :  { %814 = vmatpush2.bf16.msra.mxu1 %v2649_v31  ;;  %840 = vmatprep.subr.bf16.mxu0 %v2660_v34  ;;  %v2757_v31 = vld [vmem:[#allocation8 + $0x360] ss:$16 sps:$4 sm:$0xff]   ;;  %v2771_v34 = vld [vmem:[#allocation8 + $0x324] ss:$16 sps:$4 sm:$0xff]  }
  0x99   :  { %815 = vmatprep.subr.bf16.mxu1 %v2657_v33  ;;  %v2763_v33 = vld [vmem:[#allocation8 + $0x340] ss:$16 sps:$4 sm:$0xff]  }
  0x9b   :  { %841 = vmatpush1.bf16.msra.mxu0 %v2658_v37  ;;  %v2777_v37 = vld [vmem:[#allocation8 + $0x304] ss:$16 sps:$4 sm:$0xff]  }
  0x9c   :  { %816 = vmatpush2.bf16.msra.mxu1 %v2655_v36  ;;  %1665 = vmatprep.subr.bf16.mxu0 %v2663_v38  ;;  %v2769_v36 = vld [vmem:[#allocation8 + $0x320] ss:$16 sps:$4 sm:$0xff]  }
  0x9d   :  { %1706 = vmatprep.subr.bf16.mxu1 %v2690_v47  ;;  %v2775_v38 = vld [vmem:[#allocation8 + $0x300] ss:$16 sps:$4 sm:$0xff]   ;;  %v190_v47 = vld [vmem:[#allocation7] sm:$0xf] }
  0x9e   :  { %859 = vmatmul.mubr.bf16.vlgmr.msra.gmra.mxu0 %v3098_v35  ;;  %v2694_v35 = vld [vmem:[#allocation8 + $0x2c0] ss:$16 sps:$4 sm:$0xff]  }
  0x9f   :  { %818 = vmatmul.mubr.bf16.vlgmr.msra.gmra.mxu1 %v3101_v7  ;;  %1666 = vmatpush1.bf16.msra.mxu0 %v2661_v39  ;;  %v2703_v7 = vld [vmem:[#allocation8 + $0x180] ss:$16 sps:$4 sm:$0xff]   ;;  %v2786_v39 = vld [vmem:[#allocation8 + $0x2ec] ss:$16 sps:$4 sm:$0xff]  }
  0xa0   :  { %1667 = vmatprep.subr.bf16.mxu0 %v2666_v40  ;;  %1707 = vmatpush1.bf16.msra.mxu1 %v2688_v46 }
  0xa1   :  { %1708 = vmatprep.subr.bf16.mxu1 %v2696_v49 }
  0xa3   :  { %1668 = vmatpush1.bf16.msra.mxu0 %v2664_v41 }
  0xa4   :  { %1669 = vmatprep.subr.bf16.mxu0 %v2669_v42  ;;  %1709 = vmatpush1.bf16.msra.mxu1 %v2694_v35 }
  0xa5   :  { %1710 = vmatprep.subr.bf16.mxu1 %v2702_v52 }
  0xa7   :  { %1670 = vmatpush1.bf16.msra.mxu0 %v2667_v43 }
  0xa8   :  { %1671 = vmatprep.subr.bf16.mxu0 %v2672_v44  ;;  %1711 = vmatpush1.bf16.msra.mxu1 %v2700_v53  ;;  %v192_v44 = vlaneseq }
  0xa9   :  { %1712 = vmatprep.subr.bf16.mxu1 %v2708_v63  ;;  %v2744_v63 = vld [vmem:[#allocation8 + $0xcc] ss:$16 sps:$4 sm:$0xff]  }
  0xab   :  { %1672 = vmatpush1.bf16.msra.mxu0 %v2670_v45  ;;  %v3107_v45 = vshrl.u32 %v192_v44, 7  ;;  %v2796_v44 = vld [vmem:[#allocation8 + $0x2a8] ss:$16 sps:$4 sm:$0xff]  }
  0xac   :  { %1673 = vmatprep.subr.bf16.mxu0 %v2675_v48  ;;  %1713 = vmatpush1.bf16.msra.mxu1 %v2706_v2 }
  0xad   :  { %1714 = vmatprep.subr.bf16.mxu1 %v2714_v4  ;;  %v194_v46 = vsub.s32 0, %v3107_v45  ;;  %v198_v48 = vsub.s32 1, %v3107_v45  ;;  %v202_v2 = vsub.s32 2, %v3107_v45  ;;  %v206_v4 = vsub.s32 3, %v3107_v45 }
  0xaf   :  { %1674 = vmatpush1.bf16.msra.mxu0 %v2673_v50  ;;  %v195_v49 = vrot.slane %v190_v47, %v194_v46  ;;  %v199_v50 = vrot.slane %v190_v47, %v198_v48 }
  0xb0   :  { %1675 = vmatprep.subr.bf16.mxu0 %v2678_v51  ;;  %1715 = vmatpush1.bf16.msra.mxu1 %v2712_v6  ;;  %v203_v6 = vrot.slane %v190_v47, %v202_v2 }
  0xb1   :  { %1716 = vmatprep.subr.bf16.mxu1 %v2720_v8  ;;  %v207_v8 = vrot.slane %v190_v47, %v206_v4  ;;  %v2801_v47 = vld [vmem:[#allocation8 + $0x18c] ss:$16 sps:$4 sm:$0xff]  }
  0xb3   :  { %1676 = vmatpush1.bf16.msra.mxu0 %v2676_v54 }
  0xb4   :  { %1677 = vmatprep.subr.bf16.mxu0 %v2681_v55  ;;  %1717 = vmatpush1.bf16.msra.mxu1 %v2718_v10 }
  0xb5   :  { %1718 = vmatprep.subr.bf16.mxu1 %v2726_v12  ;;  %v2754_v12 = vld [vmem:[#allocation8 + $0x88] ss:$16 sps:$4 sm:$0xff]  }
  0xb7   :  { %1678 = vmatpush1.bf16.msra.mxu0 %v2679_v56 }
  0xb8   :  { %1679 = vmatprep.subr.bf16.mxu0 %v2684_v57  ;;  %1719 = vmatpush1.bf16.msra.mxu1 %v2724_v14 }
  0xb9   :  { %1720 = vmatprep.subr.bf16.mxu1 %v2732_v16 }
  0xbb   :  { %1680 = vmatpush1.bf16.msra.mxu0 %v2682_v58 }
  0xbc   :  { %1681 = vmatprep.subr.bf16.mxu0 %v2687_v59  ;;  %1721 = vmatpush1.bf16.msra.mxu1 %v2730_v18 }
  0xbd   :  { %1722 = vmatprep.subr.bf16.mxu1 %v2735_v20 }
  0xbf   :  { %1682 = vmatpush2.bf16.msra.mxu0 %v2685_v60 }
  0xc0   :  { %1683 = vmatprep.subr.bf16.mxu0 %v2693_v61  ;;  %1723 = vmatpush2.bf16.msra.mxu1 %v2733_v22  ;;  %v2736_v61 = vld [vmem:[#allocation8 + $0xe8] ss:$16 sps:$4 sm:$0xff]  }
  0xc1   :  { %1724 = vmatprep.subr.bf16.mxu1 %v2741_v25  ;;  %v2766_v25 = vld [vmem:[#allocation8 + $0x48] ss:$16 sps:$4 sm:$0xff]  }
  0xc3   :  { %1684 = vmatpush2.bf16.msra.mxu0 %v2691_v62 }
  0xc4   :  { %1685 = vmatprep.subr.bf16.mxu0 %v2699_v1  ;;  %1725 = vmatpush2.bf16.msra.mxu1 %v2739_v24  ;;  %v2742_v1 = vld [vmem:[#allocation8 + $0xc8] ss:$16 sps:$4 sm:$0xff]   ;;  %v2768_v24 = vld [vmem:[#allocation8 + $0x4c] ss:$16 sps:$4 sm:$0xff]  }
  0xc5   :  { %1726 = vmatprep.subr.bf16.mxu1 %v2747_v0  ;;  %v2780_v0 = vld [vmem:[#allocation8 + $0xc] ss:$16 sps:$4 sm:$0xff]  }
  0xc7   :  { %1686 = vmatpush2.bf16.msra.mxu0 %v2697_v3  ;;  %v2750_v3 = vld [vmem:[#allocation8 + $0xac] ss:$16 sps:$4 sm:$0xff]  }
  0xc8   :  { %1687 = vmatprep.subr.bf16.mxu0 %v2705_v5  ;;  %1727 = vmatpush2.bf16.msra.mxu1 %v2745_v27  ;;  %v2748_v5 = vld [vmem:[#allocation8 + $0xa8] ss:$16 sps:$4 sm:$0xff]  }
  0xc9   :  { %1728 = vmatprep.subr.bf16.mxu1 %v2753_v28  ;;  %v2772_v27 = vld [vmem:[#allocation8 + $0x28] ss:$16 sps:$4 sm:$0xff]  }
  0xca   :  { %v2778_v28 = vld [vmem:[#allocation8 + $0x8] ss:$16 sps:$4 sm:$0xff]  }
  0xcb   :  { %1688 = vmatpush2.bf16.msra.mxu0 %v2703_v7  ;;  %v2756_v7 = vld [vmem:[#allocation8 + $0x8c] ss:$16 sps:$4 sm:$0xff]  }
  0xcc   :  { %1689 = vmatprep.subr.bf16.mxu0 %v2711_v9  ;;  %1729 = vmatpush2.bf16.msra.mxu1 %v2751_v29  ;;  %v2783_v29 = vld [vmem:[#allocation8 + $0x1ec] ss:$16 sps:$4 sm:$0xff]  }
  0xcd   :  { %1730 = vmatprep.subr.bf16.mxu1 %v2759_v30 }
  0xcf   :  { %1690 = vmatpush2.bf16.msra.mxu0 %v2709_v11 }
  0xd0   :  { %1691 = vmatprep.subr.bf16.mxu0 %v2717_v13  ;;  %1731 = vmatpush2.bf16.msra.mxu1 %v2757_v31 }
  0xd1   :  { %1732 = vmatprep.subr.bf16.mxu1 %v2765_v32 }
  0xd3   :  { %1692 = vmatpush2.bf16.msra.mxu0 %v2715_v15  ;;  %v2762_v15 = vld [vmem:[#allocation8 + $0x6c] ss:$16 sps:$4 sm:$0xff]  }
  0xd4   :  { %1693 = vmatprep.subr.bf16.mxu0 %v2723_v17  ;;  %1733 = vmatpush2.bf16.msra.mxu1 %v2763_v33  ;;  %v2781_v33 = vld [vmem:[#allocation8 + $0x1e8] ss:$16 sps:$4 sm:$0xff]  }
  0xd5   :  { %1734 = vmatprep.subr.bf16.mxu1 %v2771_v34  ;;  %v2784_v34 = vld [vmem:[#allocation8 + $0x2e8] ss:$16 sps:$4 sm:$0xff]  }
  0xd7   :  { %1694 = vmatpush2.bf16.msra.mxu0 %v2721_v19 }
  0xd8   :  { %1695 = vmatprep.subr.bf16.mxu0 %v2729_v21  ;;  %1735 = vmatpush2.bf16.msra.mxu1 %v2769_v36  ;;  %v2760_v21 = vld [vmem:[#allocation8 + $0x68] ss:$16 sps:$4 sm:$0xff]  }
  0xd9   :  { %1736 = vmatprep.subr.bf16.mxu1 %v2777_v37  ;;  %v2789_v37 = vld [vmem:[#allocation8 + $0x1cc] ss:$16 sps:$4 sm:$0xff]  }
  0xdb   :  { %1696 = vmatpush2.bf16.msra.mxu0 %v2727_v23 }
  0xdc   :  { %1747 = vmatprep.subr.bf16.mxu0 %v2738_v26  ;;  %1737 = vmatpush2.bf16.msra.mxu1 %v2775_v38  ;;  %v2774_v26 = vld [vmem:[#allocation8 + $0x2c] ss:$16 sps:$4 sm:$0xff]  }
  0xdd   :  { %1788 = vmatprep.subr.bf16.mxu1 %v2786_v39  ;;  %v2792_v38 = vld [vmem:[#allocation8 + $0x2cc] ss:$16 sps:$4 sm:$0xff]   ;;  %v2787_v39 = vld [vmem:[#allocation8 + $0x1c8] ss:$16 sps:$4 sm:$0xff]  }
 0x11f   :  { %v778_v40 = vpop.f32.mrf.mxu1 }
 0x121   :  { %v780_v41 = vpop.f32.mrf.mxu1 }
 0x123   :  { %v782_v42 = vpop.f32.mrf.mxu1 }
 0x124   :  { %v2798_v42 = vld [vmem:[#allocation8 + $0x2ac] ss:$16 sps:$4 sm:$0xff]  }
 0x125   :  { %v783_v43 = vpop.f32.mrf.mxu1 }
 0x126   :  { %v2793_v43 = vld [vmem:[#allocation8 + $0x1a8] ss:$16 sps:$4 sm:$0xff]  }
 0x13e   :  { %v737_v51 = vpop.f32.mrf.mxu0 }
 0x13f   :  { %v738_v35 = vadd.f32 %v737_v51, %v195_v49  ;;  %v2804_v49 = vld [vmem:[#allocation8 + $0x28c] ss:$16 sps:$4 sm:$0xff]   ;;  %v2802_v51 = vld [vmem:[#allocation8 + $0x288] ss:$16 sps:$4 sm:$0xff]  }
 0x140   :  { %v739_v52 = vpop.f32.mrf.mxu0 }
 0x141   :  { %v779_v53 = vadd.f32 %v778_v40, %v738_v35  ;;  %v740_v54 = vadd.f32 %v739_v52, %v199_v50  ;;  %v2790_v40 = vld [vmem:[#allocation8 + $0x2c8] ss:$16 sps:$4 sm:$0xff]   ;;  %v2807_v35 = vld [vmem:[#allocation8 + $0x16c] ss:$16 sps:$4 sm:$0xff]  }
 0x142   :  { %v741_v55 = vpop.f32.mrf.mxu0  ;;  %v2799_v50 = vld [vmem:[#allocation8 + $0x188] ss:$16 sps:$4 sm:$0xff]   ;;  %v2810_v52 = vld [vmem:[#allocation8 + $0x26c] ss:$16 sps:$4 sm:$0xff]  }
 0x143   :  { %v781_v56 = vadd.f32 %v780_v41, %v740_v54  ;;  %2885 = vtanh.f32 %v779_v53  ;;  %v2795_v41 = vld [vmem:[#allocation8 + $0x1ac] ss:$16 sps:$4 sm:$0xff]   ;;  %v2805_v53 = vld [vmem:[#allocation8 + $0x168] ss:$16 sps:$4 sm:$0xff]  }
 0x144   :  { %v742_v57 = vpop.f32.mrf.mxu0  ;;  %v2808_v54 = vld [vmem:[#allocation8 + $0x268] ss:$16 sps:$4 sm:$0xff]   ;;  %v2813_v55 = vld [vmem:[#allocation8 + $0x14c] ss:$16 sps:$4 sm:$0xff]  }
 0x145   :  { %2887 = vtanh.f32 %v781_v56  ;;  %v2816_v56 = vld [vmem:[#allocation8 + $0x24c] ss:$16 sps:$4 sm:$0xff]   ;;  %v2811_v57 = vld [vmem:[#allocation8 + $0x148] ss:$16 sps:$4 sm:$0xff]  }
 0x150   :  { %v2886_v58 = vpop.eup %2885 }
 0x151   :  { %v3115_v62 = vpack.c.bf16 %v2886_v58, %v2886_v58  ;;  %v2814_v58 = vld [vmem:[#allocation8 + $0x248] ss:$16 sps:$4 sm:$0xff]  }
 0x152   :  { %v2888_v59 = vpop.eup %2887 }
 0x153   :  { %v872_v60 = vpack.c.bf16 %v2888_v59, %v2888_v59  ;;  %v2819_v59 = vld [vmem:[#allocation8 + $0x12c] ss:$16 sps:$4 sm:$0xff]  }
 0x155   :  { %1697 = vmatprep.mubr.bf16.mxu0 %v872_v60 }
 0x156   :  { %1698 = vmatmul.mubr.bf16.vlgmr.msra.gmra.mxu0 %v3115_v62 }
 0x157   :  { %1748 = vmatpush1.bf16.msra.mxu0 %v2736_v61  ;;  %1779 = vmatprep.mubr.bf16.mxu0 %v872_v60  ;;  %v2822_v60 = vld [vmem:[#allocation8 + $0x22c] ss:$16 sps:$4 sm:$0xff]   ;;  %v2817_v61 = vld [vmem:[#allocation8 + $0x128] ss:$16 sps:$4 sm:$0xff]  }
 0x158   :  { %1749 = vmatprep.subr.bf16.mxu0 %v2744_v63  ;;  %v2820_v63 = vld [vmem:[#allocation8 + $0x228] ss:$16 sps:$4 sm:$0xff]  }
 0x15b   :  { %1750 = vmatpush1.bf16.msra.mxu0 %v2742_v1  ;;  %v2825_v1 = vld [vmem:[#allocation8 + $0x10c] ss:$16 sps:$4 sm:$0xff]  }
 0x15c   :  { %1751 = vmatprep.subr.bf16.mxu0 %v2750_v3  ;;  %v2828_v3 = vld [vmem:[#allocation8 + $0x20c] ss:$16 sps:$4 sm:$0xff]  }
 0x15e   :  { %v860_v10 = vpop.f32.mrf.mxu0 }
 0x15f   :  { %v819_v9 = vpop.f32.mrf.mxu1  ;;  %1752 = vmatpush1.bf16.msra.mxu0 %v2748_v5  ;;  %v2823_v5 = vld [vmem:[#allocation8 + $0x108] ss:$16 sps:$4 sm:$0xff]  }
 0x160   :  { %v820_v11 = vadd.f32 %v819_v9, %v203_v6  ;;  %v862_v14 = vpop.f32.mrf.mxu0  ;;  %1753 = vmatprep.subr.bf16.mxu0 %v2756_v7  ;;  %v2826_v6 = vld [vmem:[#allocation8 + $0x208] ss:$16 sps:$4 sm:$0xff]   ;;  %v2831_v7 = vld [vmem:[#allocation8 + $0x3ec] ss:$16 sps:$4 sm:$0xff]  }
 0x161   :  { %v821_v13 = vpop.f32.mrf.mxu1  ;;  %v2834_v9 = vld [vmem:[#allocation8 + $0x3cc] ss:$16 sps:$4 sm:$0xff]  }
 0x162   :  { %v861_v16 = vadd.f32 %v860_v10, %v820_v11  ;;  %v822_v17 = vadd.f32 %v821_v13, %v207_v8  ;;  %v864_v19 = vpop.f32.mrf.mxu0  ;;  %v2829_v8 = vld [vmem:[#allocation8 + $0x3e8] ss:$16 sps:$4 sm:$0xff]   ;;  %v2837_v11 = vld [vmem:[#allocation8 + $0x3ac] ss:$16 sps:$4 sm:$0xff]  }
 0x163   :  { %v823_v18 = vpop.f32.mrf.mxu1  ;;  %1754 = vmatpush1.bf16.msra.mxu0 %v2754_v12  ;;  %v2832_v10 = vld [vmem:[#allocation8 + $0x3c8] ss:$16 sps:$4 sm:$0xff]   ;;  %v2840_v13 = vld [vmem:[#allocation8 + $0x38c] ss:$16 sps:$4 sm:$0xff]  }
 0x164   :  { %v863_v20 = vadd.f32 %v862_v14, %v822_v17  ;;  %2889 = vtanh.f32 %v861_v16  ;;  %v865_v23 = vpop.f32.mrf.mxu0  ;;  %1755 = vmatprep.subr.bf16.mxu0 %v2762_v15  ;;  %v2835_v12 = vld [vmem:[#allocation8 + $0x3a8] ss:$16 sps:$4 sm:$0xff]   ;;  %v2855_v16 = vld [vmem:[#allocation10 + $0x70] sm:$0xff]   ;;  %v2843_v19 = vld [vmem:[#allocation8 + $0x36c] ss:$16 sps:$4 sm:$0xff]  }
 0x165   :  { %v824_v22 = vpop.f32.mrf.mxu1  ;;  %v2853_v14 = vld [vmem:[#allocation10 + $0x78] sm:$0xff]   ;;  %v2856_v18 = vld [vmem:[#allocation10 + $0x30] sm:$0xff]  }
 0x166   :  { %2891 = vtanh.f32 %v863_v20  ;;  %v2854_v15 = vld [vmem:[#allocation10 + $0x38] sm:$0xff]  }
 0x167   :  { %1756 = vmatpush1.bf16.msra.mxu0 %v2760_v21  ;;  %v2838_v17 = vld [vmem:[#allocation8 + $0x388] ss:$16 sps:$4 sm:$0xff]   ;;  %v2846_v22 = vld [vmem:[#allocation8 + $0x34c] ss:$16 sps:$4 sm:$0xff]  }
 0x168   :  { %1757 = vmatprep.subr.bf16.mxu0 %v2768_v24  ;;  %v2841_v20 = vld [vmem:[#allocation8 + $0x368] ss:$16 sps:$4 sm:$0xff]   ;;  %v2849_v24 = vld [vmem:[#allocation8 + $0x32c] ss:$16 sps:$4 sm:$0xff]  }
 0x169   :  { %v2858_v21 = vld [vmem:[#allocation10 + $0x28] sm:$0xff]  }
 0x16a   :  { %v2844_v23 = vld [vmem:[#allocation8 + $0x348] ss:$16 sps:$4 sm:$0xff]  }
 0x16b   :  { %1758 = vmatpush1.bf16.msra.mxu0 %v2766_v25  ;;  %v2847_v25 = vld [vmem:[#allocation8 + $0x328] ss:$16 sps:$4 sm:$0xff]  }
 0x16c   :  { %1759 = vmatprep.subr.bf16.mxu0 %v2774_v26  ;;  %v2852_v26 = vld [vmem:[#allocation8 + $0x30c] ss:$16 sps:$4 sm:$0xff]  }
 0x16f   :  { %1760 = vmatpush1.bf16.msra.mxu0 %v2772_v27  ;;  %v2850_v27 = vld [vmem:[#allocation8 + $0x308] ss:$16 sps:$4 sm:$0xff]  }
 0x170   :  { %1761 = vmatprep.subr.bf16.mxu0 %v2780_v0  ;;  %v2859_v0 = vld [vmem:[#allocation10 + $0x60] sm:$0xff]  }
 0x171   :  { %v2890_v30 = vpop.eup %2889 }
 0x172   :  { %v3124_v36 = vpack.c.bf16 %v2890_v30, %v2890_v30  ;;  %v2862_v30 = vld [vmem:[#allocation10 + $0x18] sm:$0xff]  }
 0x173   :  { %v2892_v31 = vpop.eup %2891  ;;  %1762 = vmatpush1.bf16.msra.mxu0 %v2778_v28  ;;  %v2860_v28 = vld [vmem:[#allocation10 + $0x20] sm:$0xff]  }
 0x174   :  { %v874_v32 = vpack.c.bf16 %v2892_v31, %v2892_v31  ;;  %1763 = vmatprep.subr.bf16.mxu0 %v2783_v29  ;;  %v2861_v29 = vld [vmem:[#allocation10 + $0x58] sm:$0xff]   ;;  %v2863_v31 = vld [vmem:[#allocation10 + $0x50] sm:$0xff]  }
 0x176   :  { %1738 = vmatprep.mubr.bf16.mxu1 %v874_v32 }
 0x177   :  { %1739 = vmatmul.mubr.bf16.vlgmr.msra.gmra.mxu1 %v3124_v36  ;;  %1764 = vmatpush2.bf16.msra.mxu0 %v2781_v33  ;;  %v2865_v33 = vld [vmem:[#allocation10 + $0x48] sm:$0xff]  }
 0x178   :  { %1789 = vmatpush1.bf16.msra.mxu1 %v2784_v34  ;;  %1820 = vmatprep.mubr.bf16.mxu1 %v874_v32  ;;  %v2864_v32 = vld [vmem:[#allocation10 + $0x10] sm:$0xff]   ;;  %v2866_v34 = vld [vmem:[#allocation10 + $0x8] sm:$0xff]  }
 0x179   :  { %1765 = vmatprep.subr.bf16.mxu0 %v2789_v37  ;;  %1790 = vmatprep.subr.bf16.mxu1 %v2792_v38  ;;  %v2867_v37 = vld [vmem:[#allocation10 + $0x40] sm:$0xff]  }
 0x17a   :  { %v2868_v38 = vld [vmem:[#allocation10] sm:$0xff]  }
 0x17b   :  { %1766 = vmatpush2.bf16.msra.mxu0 %v2787_v39  ;;  %v2870_v39 = vld [vmem:[#allocation10 + $0xb8] sm:$0xff]  }
 0x17c   :  { %1791 = vmatpush1.bf16.msra.mxu1 %v2790_v40  ;;  %1767 = vmatprep.subr.bf16.mxu0 %v2795_v41  ;;  %v2871_v40 = vld [vmem:[#allocation10 + $0xf0] sm:$0xff]  }
 0x17d   :  { %1792 = vmatprep.subr.bf16.mxu1 %v2798_v42  ;;  %v2872_v41 = vld [vmem:[#allocation10 + $0xb0] sm:$0xff]   ;;  %v2873_v42 = vld [vmem:[#allocation10 + $0xe8] sm:$0xff]  }
 0x17f   :  { %1768 = vmatpush2.bf16.msra.mxu0 %v2793_v43  ;;  %v2874_v43 = vld [vmem:[#allocation10 + $0xa8] sm:$0xff]  }
 0x180   :  { %1793 = vmatpush1.bf16.msra.mxu1 %v2796_v44  ;;  %1769 = vmatprep.subr.bf16.mxu0 %v2801_v47  ;;  %v2875_v44 = vld [vmem:[#allocation10 + $0xe0] sm:$0xff]  }
 0x181   :  { %1794 = vmatprep.subr.bf16.mxu1 %v2804_v49  ;;  %v2876_v47 = vld [vmem:[#allocation10 + $0xa0] sm:$0xff]   ;;  %v2877_v49 = vld [vmem:[#allocation10 + $0xd8] sm:$0xff]  }
 0x183   :  { %1770 = vmatpush2.bf16.msra.mxu0 %v2799_v50  ;;  %v2878_v50 = vld [vmem:[#allocation10 + $0x98] sm:$0xff]  }
 0x184   :  { %1795 = vmatpush1.bf16.msra.mxu1 %v2802_v51  ;;  %1771 = vmatprep.subr.bf16.mxu0 %v2807_v35  ;;  %v2879_v51 = vld [vmem:[#allocation10 + $0xd0] sm:$0xff]  }
 0x185   :  { %1796 = vmatprep.subr.bf16.mxu1 %v2810_v52  ;;  %v2880_v35 = vld [vmem:[#allocation10 + $0x90] sm:$0xff]   ;;  %v2881_v52 = vld [vmem:[#allocation10 + $0xc8] sm:$0xff]  }
 0x187   :  { %1772 = vmatpush2.bf16.msra.mxu0 %v2805_v53  ;;  %v2882_v53 = vld [vmem:[#allocation10 + $0x88] sm:$0xff]  }
 0x188   :  { %1797 = vmatpush1.bf16.msra.mxu1 %v2808_v54  ;;  %1773 = vmatprep.subr.bf16.mxu0 %v2813_v55  ;;  %v2883_v54 = vld [vmem:[#allocation10 + $0xc0] sm:$0xff]  }
 0x189   :  { %1798 = vmatprep.subr.bf16.mxu1 %v2816_v56  ;;  %v2884_v55 = vld [vmem:[#allocation10 + $0x80] sm:$0xff]  }
 0x18b   :  { %1774 = vmatpush2.bf16.msra.mxu0 %v2811_v57 }
 0x18c   :  { %1799 = vmatpush1.bf16.msra.mxu1 %v2814_v58  ;;  %1775 = vmatprep.subr.bf16.mxu0 %v2819_v59 }
 0x18d   :  { %1800 = vmatprep.subr.bf16.mxu1 %v2822_v60  ;;  %v1003_v60 = vld [vmem:[%s3150_s4] sm:$0xf] }
 0x18f   :  { %1776 = vmatpush2.bf16.msra.mxu0 %v2817_v61  ;;  %v1008_v61 = vrot.slane %v1003_v60, %v194_v46 }
 0x190   :  { %1801 = vmatpush1.bf16.msra.mxu1 %v2820_v63  ;;  %1777 = vmatprep.subr.bf16.mxu0 %v2825_v1  ;;  %v1012_v63 = vrot.slane %v1003_v60, %v198_v48 }
 0x191   :  { %1802 = vmatprep.subr.bf16.mxu1 %v2828_v3 }
 0x193   :  { %1778 = vmatpush2.bf16.msra.mxu0 %v2823_v5 }
 0x194   :  { %1803 = vmatpush1.bf16.msra.mxu1 %v2826_v6  ;;  %2459 = vmatprep.subr.bf16.mxu0 %v2853_v14 }
 0x195   :  { %1804 = vmatprep.subr.bf16.mxu1 %v2831_v7 }
 0x196   :  { %1780 = vmatmul.mubr.bf16.vlgmr.msra.gmra.mxu0 %v3115_v62  ;;  %v2857_v62 = vld [vmem:[#allocation10 + $0x68] sm:$0xff]  }
 0x197   :  { %2460 = vmatpush3.bf16.msra.mxu0 %v2854_v15 }
 0x198   :  { %1805 = vmatpush2.bf16.msra.mxu1 %v2829_v8  ;;  %2461 = vmatprep.subr.bf16.mxu0 %v2855_v16 }
 0x199   :  { %1806 = vmatprep.subr.bf16.mxu1 %v2834_v9 }
 0x19b   :  { %2462 = vmatpush3.bf16.msra.mxu0 %v2856_v18  ;;  %v1020_v18 = vrot.slane %v1003_v60, %v206_v4 }
 0x19c   :  { %1807 = vmatpush2.bf16.msra.mxu1 %v2832_v10  ;;  %2463 = vmatprep.subr.bf16.mxu0 %v2857_v62 }
 0x19d   :  { %1808 = vmatprep.subr.bf16.mxu1 %v2837_v11 }
 0x19f   :  { %2464 = vmatpush3.bf16.msra.mxu0 %v2858_v21 }
 0x1a0   :  { %1809 = vmatpush2.bf16.msra.mxu1 %v2835_v12  ;;  %2465 = vmatprep.subr.bf16.mxu0 %v2859_v0 }
 0x1a1   :  { %1810 = vmatprep.subr.bf16.mxu1 %v2840_v13 }
 0x1a3   :  { %2466 = vmatpush3.bf16.msra.mxu0 %v2860_v28 }
 0x1a4   :  { %1811 = vmatpush2.bf16.msra.mxu1 %v2838_v17  ;;  %2467 = vmatprep.subr.bf16.mxu0 %v2861_v29  ;;  %v1016_v17 = vrot.slane %v1003_v60, %v202_v2 }
 0x1a5   :  { %1812 = vmatprep.subr.bf16.mxu1 %v2843_v19 }
 0x1a7   :  { %2468 = vmatpush3.bf16.msra.mxu0 %v2862_v30 }
 0x1a8   :  { %1813 = vmatpush2.bf16.msra.mxu1 %v2841_v20  ;;  %2469 = vmatprep.subr.bf16.mxu0 %v2863_v31  ;;  %v2426_v31 = vld [vmem:[%s3152_s6] ss:$0 sm:$0xff] }
 0x1a9   :  { %1814 = vmatprep.subr.bf16.mxu1 %v2846_v22 }
 0x1ab   :  { %2470 = vmatpush3.bf16.msra.mxu0 %v2864_v32 }
 0x1ac   :  { %1815 = vmatpush2.bf16.msra.mxu1 %v2844_v23  ;;  %2471 = vmatprep.subr.bf16.mxu0 %v2865_v33 }
 0x1ad   :  { %1816 = vmatprep.subr.bf16.mxu1 %v2849_v24 }
 0x1af   :  { %2472 = vmatpush3.bf16.msra.mxu0 %v2866_v34 }
 0x1b0   :  { %1817 = vmatpush2.bf16.msra.mxu1 %v2847_v25  ;;  %2473 = vmatprep.subr.bf16.mxu0 %v2867_v37 }
 0x1b1   :  { %1818 = vmatprep.subr.bf16.mxu1 %v2852_v26 }
 0x1b3   :  { %2474 = vmatpush3.bf16.msra.mxu0 %v2868_v38 }
 0x1b4   :  { %1819 = vmatpush2.bf16.msra.mxu1 %v2850_v27 }
 0x1b7   :  { %1821 = vmatmul.mubr.bf16.vlgmr.msra.gmra.mxu1 %v3124_v36  ;;  %v2869_v36 = vld [vmem:[#allocation10 + $0xf8] sm:$0xff]  }
 0x1b8   :  { %2481 = vmatprep.subr.bf16.mxu1 %v2869_v36 }
 0x1b9   :  { %2482 = vmatpush3.bf16.msra.mxu1 %v2870_v39 }
 0x1ba   :  { %2483 = vmatprep.subr.bf16.mxu1 %v2871_v40 }
 0x1bd   :  { %2484 = vmatpush3.bf16.msra.mxu1 %v2872_v41 }
 0x1be   :  { %2485 = vmatprep.subr.bf16.mxu1 %v2873_v42 }
 0x1c1   :  { %2486 = vmatpush3.bf16.msra.mxu1 %v2874_v43 }
 0x1c2   :  { %2487 = vmatprep.subr.bf16.mxu1 %v2875_v44 }
 0x1c5   :  { %2488 = vmatpush3.bf16.msra.mxu1 %v2876_v47 }
 0x1c6   :  { %2489 = vmatprep.subr.bf16.mxu1 %v2877_v49 }
 0x1c9   :  { %2490 = vmatpush3.bf16.msra.mxu1 %v2878_v50 }
 0x1ca   :  { %2491 = vmatprep.subr.bf16.mxu1 %v2879_v51 }
 0x1cd   :  { %2492 = vmatpush3.bf16.msra.mxu1 %v2880_v35 }
 0x1ce   :  { %2493 = vmatprep.subr.bf16.mxu1 %v2881_v52 }
 0x1d1   :  { %2494 = vmatpush3.bf16.msra.mxu1 %v2882_v53 }
 0x1d2   :  { %2495 = vmatprep.subr.bf16.mxu1 %v2883_v54 }
 0x1d5   :  { %2496 = vmatpush3.bf16.msra.mxu1 %v2884_v55 }
 0x216   :  { %v1699_v56 = vpop.f32.mrf.mxu0 }
 0x217   :  { %v1700_v1 = vadd.f32 %v1699_v56, %v1008_v61 }
 0x218   :  { %v1701_v57 = vpop.f32.mrf.mxu0 }
 0x219   :  { %v1702_v5 = vadd.f32 %v1701_v57, %v1012_v63 }
 0x21a   :  { %v1703_v58 = vpop.f32.mrf.mxu0 }
 0x21c   :  { %v1704_v59 = vpop.f32.mrf.mxu0 }
 0x237   :  { %v1740_v3 = vpop.f32.mrf.mxu1 }
 0x238   :  { %v1741_v6 = vadd.f32 %v1740_v3, %v1700_v1 }
 0x239   :  { %v1742_v7 = vpop.f32.mrf.mxu1 }
 0x23a   :  { %v1743_v8 = vadd.f32 %v1742_v7, %v1702_v5  ;;  %2893 = vtanh.f32 %v1741_v6 }
 0x23b   :  { %v1744_v9 = vpop.f32.mrf.mxu1 }
 0x23c   :  { %2895 = vtanh.f32 %v1743_v8 }
 0x23d   :  { %v1745_v10 = vpop.f32.mrf.mxu1 }
 0x247   :  { %v2894_v11 = vpop.eup %2893 }
 0x248   :  { %v1833_v14 = vpack.c.bf16 %v2894_v11, %v2894_v11 }
 0x249   :  { %v2896_v12 = vpop.eup %2895 }
 0x24a   :  { %v1834_v13 = vpack.c.bf16 %v2896_v12, %v2896_v12 }
 0x24c   :  { %2132 = vmatprep.mubr.bf16.mxu0 %v1834_v13 }
 0x24d   :  { %2133 = vmatmul.mubr.bf16.vlgmr.msra.gmra.mxu0 %v1833_v14 }
 0x256   :  { %v1781_v46 = vpop.f32.mrf.mxu0 }
 0x257   :  { %v1782_v19 = vadd.f32 %v1781_v46, %v1016_v17 }
 0x258   :  { %v1783_v15 = vpop.f32.mrf.mxu0 }
 0x259   :  { %v1784_v20 = vadd.f32 %v1783_v15, %v1020_v18 }
 0x25a   :  { %v1785_v16 = vpop.f32.mrf.mxu0 }
 0x25c   :  { %v1786_v48 = vpop.f32.mrf.mxu0 }
 0x277   :  { %v1822_v62 = vpop.f32.mrf.mxu1 }
 0x278   :  { %v1823_v21 = vadd.f32 %v1822_v62, %v1782_v19 }
 0x279   :  { %v1824_v22 = vpop.f32.mrf.mxu1 }
 0x27a   :  { %v1825_v23 = vadd.f32 %v1824_v22, %v1784_v20  ;;  %2897 = vtanh.f32 %v1823_v21 }
 0x27b   :  { %v1826_v24 = vpop.f32.mrf.mxu1 }
 0x27c   :  { %2899 = vtanh.f32 %v1825_v23 }
 0x27d   :  { %v1827_v25 = vpop.f32.mrf.mxu1 }
 0x287   :  { %v2898_v26 = vpop.eup %2897 }
 0x288   :  { %v1835_v28 = vpack.c.bf16 %v2898_v26, %v2898_v26 }
 0x289   :  { %v2900_v27 = vpop.eup %2899 }
 0x28a   :  { %v1836_v0 = vpack.c.bf16 %v2900_v27, %v2900_v27 }
 0x28c   :  { %2172 = vmatprep.mubr.bf16.mxu1 %v1836_v0 }
 0x28d   :  { %2173 = vmatmul.mubr.bf16.vlgmr.msra.gmra.mxu1 %v1835_v28 }
 0x30d   :  { %v2475_v2 = vpop.f32.mrf.mxu0 }
 0x30f   :  { %v2476_v29 = vpop.f32.mrf.mxu0 }
 0x310   :  { %v2477_v30 = vadd.f32 %v2476_v29, %v2475_v2 }
 0x311   :  { %v2478_v45 = vpop.f32.mrf.mxu0 }
 0x312   :  { %v2135_v34 = vadd.f32 %v2477_v30, %v2426_v31 }
 0x313   :  { %v2479_v4 = vpop.f32.mrf.mxu0 }
 0x34d   :  { %v2497_v32 = vpop.f32.mrf.mxu1 }
 0x34f   :  { %v2498_v33 = vpop.f32.mrf.mxu1 }
 0x350   :  { %v2499_v37 = vadd.f32 %v2498_v33, %v2497_v32 }
 0x351   :  { %v2500_v38 = vpop.f32.mrf.mxu1 }
 0x352   :  { %v2175_v36 = vadd.f32 %v2499_v37, %v2135_v34 }
 0x353   :  { %v2501_v39 = vpop.f32.mrf.mxu1 }
 0x354   :  { %2901 = vtanh.f32 %v2175_v36 }
 0x361   :  { %v2902_v40 = vpop.eup %2901 }
 0x362   :  { %2181 = vst [vmem:[#allocation11] sm:$0xff] %v2902_v40 }
 0x363   :  { %3014 = shalt.err (!%p3011_p1)
}
 0x364   :  { %2191 = dma.vmem_to_hbm [thread:$0]  %s2189_s29, 128, %s3153_s7, [#allocation4]  }
 0x365   :  { %3029 = dma.done.wait [#allocation4], 128  }
 0x366   :  { %3030 = vsyncadd [#allocation4], 4294967168 }
 0x367   :  { %2195 = vsyncpa [#allocation3], 1 }
 0x368   :  { %2196 = vsyncpa [#allocation6], 1 }
 0x369   :  { %2197 = vsyncpa [#allocation9], 1 }
 0x36a   :  { %2198 = vsyncpa [#allocation4], 1 }

</bundles_post_ra>
